<compile_context>
chip_gen: v7x
topology: tpu7x:2x2x1
jax: 0.10.0
libtpu: 0.0.40
codegen_flags: <defaults>
</compile_context>

<pallas_src>
import math
import functools

import jax
import jax.numpy as jnp
from jax.experimental import pallas as pl
from jax.experimental.pallas import tpu as pltpu

LANES = 128
# Budget for the double-buffered input blocks (conservative: leaves headroom
# under v7x's 64 MiB physical VMEM; well inside v5e/v6e's 128 MiB).
_VMEM_INPUT_BUDGET = 40 * 1024 * 1024


def _wing_partial_kernel(x_ref, y_ref, o_ref, *, w, inv_eps, C, rows,
                         tile_rows, need_mask):
    """Writes this block's per-lane wing-loss partial sums to o_ref (1,1,128)."""
    d = y_ref[...].astype(jnp.float32) - x_ref[...].astype(jnp.float32)
    if need_mask:
        # Last block overhangs the array; zero out-of-range rows.  Mask is
        # applied to d BEFORE abs/log1p/where so garbage reads in the padded
        # region cannot inject NaN/Inf (wing(0) == 0).
        blk = pl.program_id(0)
        row = jax.lax.broadcasted_iota(jnp.int32, d.shape, 0) + blk * tile_rows
        d = jnp.where(row < rows, d, 0.0)
    a = jnp.abs(d)
    loss = jnp.where(a < w, w * jnp.log1p(a * inv_eps), a - C)
    # Lane-dense partial: reduce only over the sublane axis (VPU adds); the
    # cross-lane reduce happens once in the wrapper over (grid_n, 1, 128).
    o_ref[...] = jnp.sum(loss, axis=0).reshape(1, 1, LANES)


def _wing_elementwise(d, *, w, eps, C):
    """Plain-JAX wing loss (used only for the tiny <128-element tail)."""
    a = jnp.abs(d)
    return jnp.where(a < w, w * jnp.log(1.0 + a / eps), a - C)


def wing_loss_mean(x, y, *, w=1.0, eps=2.0, tile_rows=8192):
    """WingLoss with Reduction.MEAN.  x, y: same shape, any rank (e.g. NCHW).

    tile_rows: rows of 128 lanes per grid block (sweepable).  The default 8192
    gives 4 MiB f32 blocks per input (16 MiB double buffered); the explicit
    vmem_limit_bytes below makes that compile on all of v5e/v6e/v7x.
    """
    w = float(w)
    eps = float(eps)
    C = w - w * math.log(1.0 + w / eps)
    inv_eps = 1.0 / eps

    n_elem = x.size
    xf = jnp.ravel(x)  # metadata-only reshape for contiguous inputs
    yf = jnp.ravel(y)

    # Bulk: largest 128-divisible prefix handled by the kernel in its native
    # dtype; the <128-element remainder is a tiny plain-JAX epilogue.
    n_main = (n_elem // LANES) * LANES
    rows = n_main // LANES

    total = jnp.float32(0.0)

    if rows > 0:
        # Zero-copy for the common n_elem % 128 == 0 case (full-size slice is
        # elided by XLA).
        x2 = xf[:n_main].reshape(rows, LANES)
        y2 = yf[:n_main].reshape(rows, LANES)

        x_item = jnp.dtype(x.dtype).itemsize
        y_item = jnp.dtype(y.dtype).itemsize
        # Sublane multiple by packing: 8 for 32-bit, 16 for bf16/f16, 32 for 8-bit.
        mult = max(8, 32 // max(1, min(x_item, y_item, 4)))

        # Cap the tile so 2 inputs x 2 buffers stay inside the VMEM budget.
        bytes_per_row_2buf = 2 * LANES * (x_item + y_item)
        tr_cap = max(mult, _VMEM_INPUT_BUDGET // bytes_per_row_2buf)
        req = min(int(tile_rows), tr_cap)

        if rows <= mult:
            # Tiny input: one full-extent block (exempt from the (8,128) rule).
            tr = rows
        elif rows <= req:
            # Split into >= 2 blocks so the "parallel" grid axis can shard
            # across both v7x TensorCores (single-TC chips unaffected).
            half = -(-rows // 2)
            tr = ((max(mult, half) + mult - 1) // mult) * mult
        else:
            tr = max(mult, (req // mult) * mult)

        grid_n = pl.cdiv(rows, tr)
        need_mask = (rows % tr) != 0

        kernel = functools.partial(
            _wing_partial_kernel,
            w=w, inv_eps=inv_eps, C=C,
            rows=rows, tile_rows=tr, need_mask=need_mask,
        )

        # Explicit VMEM limit: double-buffered input blocks + ~25% slack +
        # 1 MiB headroom, clamped well under v7x's 64 MiB physical VMEM.
        block_in_bytes = tr * LANES * (x_item + y_item)
        vmem_limit = int(2 * block_in_bytes * 1.25) + 2 * LANES * 4 + (1 << 20)
        vmem_limit = max(4 * 1024 * 1024, min(vmem_limit, 56 * 1024 * 1024))

        cost = pl.CostEstimate(
            flops=7 * n_main,
            transcendentals=n_main,
            bytes_accessed=n_main * (x_item + y_item) + grid_n * LANES * 4,
        )

        partials = pl.pallas_call(
            kernel,
            out_shape=jax.ShapeDtypeStruct((grid_n, 1, LANES), jnp.float32),
            grid_spec=pltpu.PrefetchScalarGridSpec(
                num_scalar_prefetch=0,
                grid=(grid_n,),
                in_specs=[
                    pl.BlockSpec((tr, LANES), lambda i: (i, 0)),
                    pl.BlockSpec((tr, LANES), lambda i: (i, 0)),
                ],
                # One independent lane-dense partial per grid block: no
                # cross-step accumulator, unmasked full-lane stores, and the
                # axis can be "parallel" (megacore on v7x).
                out_specs=pl.BlockSpec((1, 1, LANES), lambda i: (i, 0, 0)),
            ),
            compiler_params=pltpu.CompilerParams(
                dimension_semantics=("parallel",),
                vmem_limit_bytes=vmem_limit,
            ),
            cost_estimate=cost,
        )(x2, y2)

        total = total + jnp.sum(partials)

    if n_main != n_elem:
        # TODO(synk): fold this <128-element tail (and the wrapper-side slice
        # it forces for non-128-divisible inputs) into the kernel via a
        # flat-index mask; the 128-divisible fast path above is zero-copy.
        d_tail = yf[n_main:].astype(jnp.float32) - xf[n_main:].astype(jnp.float32)
        total = total + jnp.sum(_wing_elementwise(d_tail, w=w, eps=eps, C=C))

    return total / jnp.float32(n_elem)


def _reference_wing_loss_mean(x, y, *, w=1.0, eps=2.0):
    C = w - w * math.log(1.0 + w / eps)
    d = y.astype(jnp.float32) - x.astype(jnp.float32)
    a = jnp.abs(d)
    loss = jnp.where(a < w, w * jnp.log(1.0 + a / eps), a - C)
    return jnp.mean(loss)


if __name__ == "__main__":
    key = jax.random.PRNGKey(0)
    kx, ky = jax.random.split(key)

    # NCHW inputs, 2048 elements -> 128-divisible fast path, grid_n = 2.
    x = jax.random.normal(kx, (2, 4, 16, 16), dtype=jnp.float32)
    y = jax.random.normal(ky, (2, 4, 16, 16), dtype=jnp.float32)

    out = wing_loss_mean(x, y, w=1.0, eps=2.0)
    out = jax.block_until_ready(out)
    ref = _reference_wing_loss_mean(x, y, w=1.0, eps=2.0)
    assert jnp.allclose(out, ref, rtol=1e-5, atol=1e-5), (out, ref)

    # Ragged shape (1155 elements): overhanging masked last block (rows=9,
    # tr=8, grid_n=2) plus the <128-element plain-JAX tail.
    kx2, ky2 = jax.random.split(ky)
    x2 = jax.random.normal(kx2, (3, 5, 7, 11), dtype=jnp.float32)
    y2 = jax.random.normal(ky2, (3, 5, 7, 11), dtype=jnp.float32)

    out2 = wing_loss_mean(x2, y2, w=1.0, eps=2.0)
    out2 = jax.block_until_ready(out2)
    ref2 = _reference_wing_loss_mean(x2, y2, w=1.0, eps=2.0)
    assert jnp.allclose(out2, ref2, rtol=1e-5, atol=1e-5), (out2, ref2)

    # bf16 inputs (384 elements): in-kernel astype path + tiny full-extent block.
    kx3, ky3 = jax.random.split(ky2)
    x3 = jax.random.normal(kx3, (2, 3, 8, 8), dtype=jnp.bfloat16)
    y3 = jax.random.normal(ky3, (2, 3, 8, 8), dtype=jnp.bfloat16)

    out3 = wing_loss_mean(x3, y3, w=1.0, eps=2.0)
    out3 = jax.block_until_ready(out3)
    ref3 = _reference_wing_loss_mean(x3, y3, w=1.0, eps=2.0)
    assert jnp.allclose(out3, ref3, rtol=1e-5, atol=1e-5), (out3, ref3)

    print("KERNEL_OK")
</pallas_src>

<mosaic_0001>
module attributes {stable_mosaic.version = 11 : i64} {
  func.func @_wing_partial_kernel(%arg0: i32, %arg1: memref<8x128xf32, #tpu.memory_space<vmem>>, %arg2: memref<8x128xf32, #tpu.memory_space<vmem>>, %arg3: memref<1x1x128xf32, #tpu.memory_space<vmem>>) attributes {dimension_semantics = [#tpu.dimension_semantics<parallel>], iteration_bounds = array<i64: 2>, scalar_prefetch = 0 : i64, scratch_operands = 0 : i64, tpu.core_type = #tpu.core_type<tc>, window_params = [{transform_indices = @transform_0, window_bounds = array<i64: 8, 128>}, {transform_indices = @transform_1, window_bounds = array<i64: 8, 128>}, {transform_indices = @transform_2, window_bounds = array<i64: 1, 1, 128>}]} {
    %c0 = arith.constant 0 : index
    %c0_0 = arith.constant 0 : index
    %0 = vector.load %arg2[%c0, %c0_0] : memref<8x128xf32, #tpu.memory_space<vmem>>, vector<8x128xf32>
    %c0_1 = arith.constant 0 : index
    %c0_2 = arith.constant 0 : index
    %1 = vector.load %arg1[%c0_1, %c0_2] : memref<8x128xf32, #tpu.memory_space<vmem>>, vector<8x128xf32>
    %2 = arith.subf %0, %1 : vector<8x128xf32>
    %3 = math.absf %2 : vector<8x128xf32>
    %cst = arith.constant 1.000000e+00 : f32
    %4 = vector.broadcast %cst : f32 to vector<8x128xf32>
    %5 = arith.cmpf olt, %3, %4 : vector<8x128xf32>
    %cst_3 = arith.constant 5.000000e-01 : f32
    %6 = vector.broadcast %cst_3 : f32 to vector<8x128xf32>
    %7 = arith.mulf %3, %6 : vector<8x128xf32>
    %8 = math.log1p %7 : vector<8x128xf32>
    %cst_4 = arith.constant 1.000000e+00 : f32
    %9 = vector.broadcast %cst_4 : f32 to vector<8x128xf32>
    %10 = arith.mulf %9, %8 : vector<8x128xf32>
    %cst_5 = arith.constant 0.594534874 : f32
    %11 = vector.broadcast %cst_5 : f32 to vector<8x128xf32>
    %12 = arith.subf %3, %11 : vector<8x128xf32>
    %13 = arith.select %5, %10, %12 : vector<8x128xi1>, vector<8x128xf32>
    %cst_6 = arith.constant dense<0.000000e+00> : vector<128xf32>
    %14 = vector.multi_reduction <add>, %13, %cst_6 [0] : vector<8x128xf32> to vector<128xf32>
    %15 = vector.shape_cast %14 : vector<128xf32> to vector<1x1x128xf32>
    %c0_7 = arith.constant 0 : index
    %c0_8 = arith.constant 0 : index
    %c0_9 = arith.constant 0 : index
    %16 = vector.load %arg3[%c0_7, %c0_8, %c0_9] : memref<1x1x128xf32, #tpu.memory_space<vmem>>, vector<1x1x128xf32>
    tpu.vector_store %arg3[%c0_7, %c0_8, %c0_9], %15 {strides = array<i32>} : memref<1x1x128xf32, #tpu.memory_space<vmem>>, vector<1x1x128xf32>,
    return
  }
  func.func @transform_0(%arg0: i32) -> (i32, i32) {
    %c0_i32 = arith.constant 0 : i32
    %c0_i32_0 = arith.constant 0 : i32
    return %arg0, %c0_i32 : i32, i32
  }
  func.func @transform_1(%arg0: i32) -> (i32, i32) {
    %c0_i32 = arith.constant 0 : i32
    %c0_i32_0 = arith.constant 0 : i32
    return %arg0, %c0_i32 : i32, i32
  }
  func.func @transform_2(%arg0: i32) -> (i32, i32, i32) {
    %c0_i32 = arith.constant 0 : i32
    %c0_i32_0 = arith.constant 0 : i32
    %c0_i32_1 = arith.constant 0 : i32
    return %arg0, %c0_i32, %c0_i32_0 : i32, i32, i32
  }
}

</mosaic_0001>

<bundles_post_ra>
// kernel: tpu_custom_call.1
= control target key start
LH: loop header
LB: loop body
LE: loop exit
PB: predicated region body
PF: predicated region fallthrough
CT: control target
= control target key end

     0   :  { %7 = vsyncpa [#allocation3], 0  ;;  %s748_s0 = inlined_call_operand.hbm [shape: f32[16,128], index: 0, kind: input, shape index: {}]   ;;  %s749_s1 = inlined_call_operand.hbm [shape: f32[16,128], index: 1, kind: input, shape index: {}]   ;;  %s750_s2 = inlined_call_operand.hbm [shape: f32[2,1,128], index: 2, kind: output, shape index: {}]  }
   0x1   :  { %9 = vsyncpa [#allocation3 + $0x1], 0 }
   0x2   :  { %10 = vsyncpa [#allocation6], 0 }
   0x3   :  { %12 = vsyncpa [#allocation6 + $0x1], 0 }
   0x4   :  { %13 = vsyncpa [#allocation4], 0 }
   0x5   :  { %15 = vsyncpa [#allocation4 + $0x1], 0  ;;  %s538_s9 = smov 0   ;;  %s540_s10 = smov 0  }
   0x6   :  { %s542_s11 = smov 0   ;;  %s544_s12 = smov 0  }
   0x7 LB: > { %s559_s13 = sadd.s32 4294967295, %s518_s12   ;;  %s321_s14 = sadd.s32 4294967294, %s518_s12   ;;  %s518_s12 = sphi %s544_s12, %s769_s12   ;;  %s514_s11 = sphi %s542_s11, %s768_s11   ;;  %s510_s10 = sphi %s540_s10, %s767_s10   ;;  %s506_s9 = sphi %s538_s9, %s766_s9  }
   0x8   : > { %s563_s15 = sadd.s32 1, %s518_s12   ;;  %s28_s16 = sadd.s32 1, %s514_s11 }
   0x9   : > { %s25_s17 = ssub.s32 %s518_s12, %s563_s15  ;;  %p35_p0 = scmp.ne.s32.totalorder %s514_s11, %s510_s10 }
   0xa   : > { %p26_p1 = scmp.eq.s32.totalorder %s25_s17, 0  ;;  %p36_p2 = scmp.eq.s32.totalorder %s518_s12, 0 }
   0xb   : > { %p41_p3 = scmp.ne.s32.totalorder %s510_s10, %s506_s9  ;;  %p42_p4 = scmp.eq.s32.totalorder %s559_s13, 0 }
   0xc   : > { %s575_s18 = scalar_select %p26_p1, %s514_s11, %s28_s16  }
   0xd   : > { %p577_p5 = por %p36_p2, %p35_p0  ;;  %p581_p6 = por %p42_p4, %p41_p3 }
   0xe   : > { %p91_p7 = scmp.eq.s32.totalorder %s559_s13, 1  ;;  %p97_p8 = scmp.eq.s32.totalorder %s321_s14, 1 }
   0xf   : > { %s754_s20 = scalar_select %p581_p6, 1, 0 }
  0x10   : > { %p352_p10 = scmp.lt.s32.totalorder %s518_s12, 2  ;;  %p588_p11 = por %p91_p7, %p35_p0 }
  0x11   : > { %p592_p12 = por %p97_p8, %p41_p3  ;;  %s597_s23 = sand.u32 1, %s514_s11  }
  0x12   : > { %s755_s21 = scalar_select %p588_p11, 1, 0 }
  0x13   : > { %s756_s22 = scalar_select %p592_p12, 1, 0 }
  0x14   : > { %s325_s24 = sshll.u32 %s518_s12, 7  ;;  %s324_s25 = sshll.u32 %s597_s23, 3 }
  0x15   : > { %s606_s28 = scalar_lea.hbm %s748_s0, %s325_s24  ;;  %s121_s29 = scalar_lea.vmem [#allocation2], %s324_s25 }
  0x16   : > { %s128_s30 = sshll.u32 %s121_s29, 4  ;;  %p612_p13 = pnand %p352_p10, %p577_p5  ;;  %s616_s30 = int_to_ptr.vmem [resolvable:$true] %s128_s30 }
  0x17   : > { %s118_s4 = scalar_lea.sflag [#allocation3], %s597_s23  ;;  %s388_s5 = scalar_lea.hbm %s606_s28, 128 }
  0x18   : > { %p389_p2 = scmp.ne.s32.totalorder %s606_s28, %s388_s5  ;;  %p390_p3 = pneg %p612_p13 }
  0x19   : > { %s393_s8 = scalar_lea.hbm %s748_s0, 256  ;;  %p394_p5 = scmp.lt.u32.totalorder %s606_s28, %s748_s0 }
  0x1a   : > { %p391_p4 = pnand %p390_p3, %p389_p2  ;;  %p395_p8 = scmp.lt.u32.totalorder %s393_s8, %s388_s5 }
  0x1b   : > { %p397_p9 = scmp.lt.u32.totalorder %s388_s5, %s606_s28 }
  0x1c   : > { %p392_p7 = pneg %p391_p4  ;;  %p396_p10 = por %p395_p8, %p394_p5 }
  0x1e   : > { %p398_p0 = por %p397_p9, %p396_p10 }
  0x20   : > { %p399_p1 = pnand %p398_p0, %p392_p7 }
  0x22   : > { %402 = shalt.err (!%p399_p1)
}
  0x23   : > { %s403_s17 = scalar_lea.vmem %s616_s30, 128  ;;  %s520_s19 = smov [#allocation2]  }
  0x24   : > { %p404_p2 = scmp.ne.s32.totalorder %s616_s30, %s403_s17  ;;  %s408_s26 = sshll.u32 %s520_s19, 4  ;;  %s409_s26 = int_to_ptr.vmem [resolvable:$false] %s408_s26 }
  0x25   : > { %s410_s27 = scalar_lea.vmem %s409_s26, 256  ;;  %p411_p11 = scmp.lt.s32.totalorder %s616_s30, %s409_s26 }
  0x26   : > { %p406_p4 = pnand %p404_p2, %p390_p3  ;;  %p412_p5 = scmp.lt.s32.totalorder %s410_s27, %s403_s17 }
  0x28   : > { %p407_p12 = pneg %p406_p4  ;;  %p413_p8 = por %p412_p5, %p411_p11 }
  0x2a   : > { %p414_p9 = pnand %p413_p8, %p407_p12 }
  0x2c   : > { %417 = shalt.err (!%p414_p9)
}
  0x2d   : > { %344 = dma.hbm_to_vmem [thread:$0]  (!%p612_p13), %s606_s28, 128, %s616_s30, %s118_s4  }
  0x2e   : > { %p758_p0 = scmp.lt.s32.totalorder %s518_s12, 3  ;;  %p759_p1 = scmp.ge.s32.totalorder %s518_s12, 1 }
  0x2f   : > { %s659_s7 = scalar_lea.hbm %s749_s1, %s325_s24  ;;  %s139_s8 = scalar_lea.vmem [#allocation5], %s324_s25 }
  0x30   : > { %p650_p7 = pnand %p759_p1, %p758_p0  ;;  %s146_s14 = sshll.u32 %s139_s8, 4  ;;  %s147_s14 = int_to_ptr.vmem [resolvable:$true] %s146_s14 }
  0x31   : > { %s136_s28 = scalar_lea.sflag [#allocation6], %s597_s23  ;;  %s418_s30 = scalar_lea.hbm %s659_s7, 128 }
  0x32   : > { %s760_s29 = scalar_select %p650_p7, 1, 0 }
  0x33   : > { %p419_p11 = scmp.ne.s32.totalorder %s659_s7, %s418_s30  ;;  %s423_s24 = scalar_lea.hbm %s749_s1, 256 }
  0x34   : > { %p424_p2 = scmp.lt.u32.totalorder %s659_s7, %s749_s1  ;;  %p425_p4 = scmp.lt.u32.totalorder %s423_s24, %s418_s30 }
  0x35   : > { %p421_p12 = pnand %p419_p11, %p390_p3  ;;  %p427_p8 = scmp.lt.u32.totalorder %s418_s30, %s659_s7 }
  0x36   : > { %p426_p5 = por %p425_p4, %p424_p2 }
  0x37   : > { %p422_p10 = pneg %p421_p12 }
  0x38   : > { %p428_p9 = por %p427_p8, %p426_p5 }
  0x3a   : > { %p429_p0 = pnand %p428_p9, %p422_p10 }
  0x3c   : > { %432 = shalt.err (!%p429_p0)
}
  0x3d   : > { %s433_s23 = scalar_lea.vmem %s147_s14, 128  ;;  %s521_s25 = smov [#allocation5]  }
  0x3e   : > { %p434_p1 = scmp.ne.s32.totalorder %s147_s14, %s433_s23  ;;  %s438_s26 = sshll.u32 %s521_s25, 4  ;;  %s439_s26 = int_to_ptr.vmem [resolvable:$false] %s438_s26 }
  0x3f   : > { %s440_s27 = scalar_lea.vmem %s439_s26, 256  ;;  %p441_p6 = scmp.lt.s32.totalorder %s147_s14, %s439_s26 }
  0x40   : > { %p436_p11 = pnand %p434_p1, %p390_p3  ;;  %p442_p7 = scmp.lt.s32.totalorder %s440_s27, %s433_s23 }
  0x42   : > { %p437_p12 = pneg %p436_p11  ;;  %p443_p2 = por %p442_p7, %p441_p6 }
  0x44   : > { %p444_p4 = pnand %p443_p2, %p437_p12 }
  0x46   : > { %447 = shalt.err (!%p444_p4)
}
  0x47   : > { %347 = dma.hbm_to_vmem [thread:$0]  (!%p612_p13), %s659_s7, 128, %s147_s14, %s136_s28  }
  0x48   : > { %p761_p10 = scmp.ne.s32.totalorder %s760_s29, 0 }
  0x49   : > { %s686_s5 = sand.u32 (!%p761_p10), 1, %s510_s10   ;;  %p762_p3 = scmp.ne.s32.totalorder (!%p761_p10), %s754_s20, 0 }
  0x4a   : > { %155 = sbr.rel (%p761_p10) target bundleno = 134 (0x86), region = 28  ;;  %s329_s6 = sshll.u32 (!%p761_p10), %s686_s5, 3 }
  0x4b   : > { %s158_s8 = scalar_lea.sflag (!%p761_p10), [#allocation3], %s686_s5  ;;  %s161_s30 = scalar_lea.vmem (!%p761_p10), [#allocation2], %s329_s6 }
  0x51   : > { %493 = dma.done.wait (%p762_p3), %s158_s8, 128  }
  0x52   : > { %495 = vsyncadd (%p762_p3), %s158_s8, 4294967168  ;;  %s167_s3 = scalar_lea.sflag [#allocation6], %s686_s5  ;;  %s170_s7 = scalar_lea.vmem [#allocation5], %s329_s6 }
  0x53   : > { %497 = dma.done.wait (%p762_p3), %s167_s3, 128  }
  0x54   : > { %499 = vsyncadd (%p762_p3), %s167_s3, 4294967168  ;;  %v195_v0 = vld [vmem:[%s170_s7] sm:$0xff]  ;;  %v196_v1 = vld [vmem:[%s161_s30] sm:$0xff]  ;;  %s194_s20 = scalar_lea.vmem [#allocation7], %s686_s5  ;;  %s332_s14 = sshll.u32 %s559_s13, 4 }
  0x55   : > { %v197_v2 = vsub.f32 %v195_v0, %v196_v1  ;;  %s232_s29 = sshll.u32 %s194_s20, 4  ;;  %s706_s16 = scalar_lea.hbm %s750_s2, %s332_s14  ;;  %s701_s29 = int_to_ptr.vmem [resolvable:$true] %s232_s29 }
  0x56   : > { %s220_s24 = scalar_lea.sflag [#allocation4], %s686_s5  ;;  %s448_s17 = scalar_lea.vmem %s701_s29, 16 }
  0x57   : > { %v198_v3 = vand.u32 2147483647, %v197_v2  ;;  %p449_p6 = scmp.ne.s32.totalorder %s701_s29, %s448_s17  ;;  %p763_p13 = scmp.ne.s32.totalorder %s755_s21, 0 }
  0x58   : > { %s522_s13 = smov [#allocation7]  }
  0x59   : > { %v200_v4 = vmul.f32 0.5, %v198_v3  ;;  %v331_v11 = vadd.f32 -0.5945349, %v198_v3  ;;  %vm199_vm1 = vcmp.lt.f32.partialorder %v198_v3, 1.0  ;;  %p450_p7 = pnand %p449_p6, %p763_p13  ;;  %s452_s19 = sshll.u32 %s522_s13, 4  ;;  %s453_s19 = int_to_ptr.vmem [resolvable:$false] %s452_s19 }
  0x5a   : > { %s454_s23 = scalar_lea.vmem %s453_s19, 32  ;;  %p455_p8 = scmp.lt.s32.totalorder %s701_s29, %s453_s19 }
  0x5b   : > { %v201_v5 = vadd.f32 1.0, %v200_v4  ;;  %v204_v6 = vmul.f32 -0.5, %v200_v4  ;;  %v207_v8 = vand.u32 2147483647, %v200_v4  ;;  %p451_p5 = pneg %p450_p7  ;;  %p456_p9 = scmp.lt.s32.totalorder %s454_s23, %s448_s17 }
  0x5d   : > { %386 = vlog2.f32 %v201_v5  ;;  %v205_v7 = vadd.f32 1.0, %v204_v6  ;;  %vm208_vm0 = vcmp.lt.f32.partialorder %v207_v8, 0.0004427343  ;;  %p457_p0 = por %p456_p9, %p455_p8 }
  0x5f   : > { %v206_v9 = vmul.f32 %v205_v7, %v200_v4  ;;  %p458_p1 = pnand %p457_p0, %p451_p5 }
  0x67   : > { %v387_v10 = vpop.eup %386 }
  0x68   : > { %v203_v12 = vmul.f32 0.6931472, %v387_v10 }
  0x6a   : > { %v209_v13 = vsel %vm208_vm0, %v206_v9, %v203_v12 }
  0x6b   : > { %v211_v14 = vsel %vm199_vm1, %v209_v13, %v331_v11 }
  0x6c   : > { %v212_v15 = vrot.slane %v211_v14, 4 }
  0x6e   : > { %v213_v16 = vadd.f32 %v212_v15, %v211_v14 }
  0x70   : > { %v214_v17 = vrot.slane %v213_v16, 2 }
  0x72   : > { %v215_v18 = vadd.f32 %v214_v17, %v213_v16 }
  0x74   : > { %v216_v19 = vrot.slane %v215_v18, 1 }
  0x76   : > { %v217_v20 = vadd.f32 %v216_v19, %v215_v18 }
  0x78   : > { %218 = vst [vmem:[%s194_s20] sm:$0x1] %v217_v20 }
  0x79   : > { %461 = shalt.err (!%p458_p1)
}
  0x7a   : > { %s462_s25 = scalar_lea.hbm %s706_s16, 16  ;;  %s466_s5 = scalar_lea.hbm %s750_s2, 32 }
  0x7b   : > { %p463_p11 = scmp.ne.s32.totalorder %s706_s16, %s462_s25  ;;  %p467_p4 = scmp.lt.u32.totalorder %s706_s16, %s750_s2 }
  0x7c   : > { %p468_p10 = scmp.lt.u32.totalorder %s466_s5, %s462_s25  ;;  %p470_p6 = scmp.lt.u32.totalorder %s462_s25, %s706_s16 }
  0x7d   : > { %p464_p12 = pnand %p463_p11, %p763_p13 }
  0x7e   : > { %p469_p3 = por %p468_p10, %p467_p4 }
  0x7f   : > { %p465_p2 = pneg %p464_p12 }
  0x80   : > { %p471_p7 = por %p470_p6, %p469_p3 }
  0x82   : > { %p472_p5 = pnand %p471_p7, %p465_p2 }
  0x84   : > { %475 = shalt.err (!%p472_p5)
}
  0x85   : > { %339 = dma.vmem_to_hbm [thread:$0]  (%p763_p13), %s701_s29, 16, %s706_s16, %s220_s24  }
  0x86 PF: > { %s244_s30 = sand.u32 1, %s506_s9   ;;  %p764_p8 = scmp.ne.s32.totalorder %s756_s22, 0 }
  0x87   : > { %p765_p9 = scmp.ge.s32.totalorder %s518_s12, 2  ;;  %s245_s3 = scalar_lea.sflag [#allocation4], %s244_s30 }
  0x89   : > { %p349_p0 = pnand %p765_p9, %p764_p8 }
  0x8b   : > { %501 = dma.done.wait (!%p349_p0), %s245_s3, 16  }
  0x8c   : > { %503 = vsyncadd (!%p349_p0), %s245_s3, 4294967280  ;;  %p18_p1 = scmp.ge.s32.totalorder %s563_s15, 4   ;;  %s766_s9 = smov %s510_s10 }
  0x8d   : > { %s767_s10 = smov %s514_s11  ;;  %s768_s11 = smov %s575_s18 }
  0x8e   : > { %s769_s12 = smov %s563_s15  ;;  %20 = sbr.rel (!%p18_p1) target bundleno = 7 (0x7), region = 86 }
  0x95   :  { %249 = vsyncpa [#allocation3], 1 }
  0x96   :  { %251 = vsyncpa [#allocation3 + $0x1], 1 }
  0x97   :  { %252 = vsyncpa [#allocation6], 1 }
  0x98   :  { %254 = vsyncpa [#allocation6 + $0x1], 1 }
  0x99   :  { %255 = vsyncpa [#allocation4], 1 }
  0x9a   :  { %257 = vsyncpa [#allocation4 + $0x1], 1 }

</bundles_post_ra>
